<compile_context>
chip_gen: v7x
topology: tpu7x:2x2x1
jax: 0.10.0
libtpu: 0.0.40
codegen_flags: <defaults>
</compile_context>

<pallas_src>
import functools
import math

import jax
import jax.numpy as jnp
from jax.experimental import pallas as pl
from jax.experimental.pallas import tpu as pltpu

_LANE = 128


def _round_up(x, m):
    return ((x + m - 1) // m) * m


def _quantile_loss_kernel(yt_ref, yp_ref, o_ref, pat_ref, *,
                          tau, log_h, n, rows_valid, tile_r, lane,
                          steps_per_core, nblocks, needs_mask):
    c = pl.program_id(0)          # parallel (core) axis
    j = pl.program_id(1)          # reduction steps handled by this core

    @pl.when(j == 0)
    def _init():
        # The output block doubles as the resident (1, 8, lane) f32 accumulator.
        o_ref[...] = jnp.zeros_like(o_ref)
        # Hoist the in-tile part of the weight exponent out of the hot loop:
        #   pat[p] = log(h) * (-p),   p = flat in-tile index = row*lane + col.
        row = jax.lax.broadcasted_iota(jnp.int32, (tile_r, lane), 0)
        col = jax.lax.broadcasted_iota(jnp.int32, (tile_r, lane), 1)
        p = row * lane + col
        pat_ref[...] = jnp.float32(-log_h) * p.astype(jnp.float32)

    b = c * steps_per_core + j    # global block index (>= nblocks only on overhang)

    # Streamed in native dtype (bf16 ok); all arithmetic / accumulation in f32.
    yt = yt_ref[...].astype(jnp.float32)
    yp = yp_ref[...].astype(jnp.float32)
    diff = yt - yp
    # Pinball loss, branch-free (valid for 0 <= tau <= 1):
    #   diff > 0 -> tau*diff ; diff <= 0 -> (1-tau)*(-diff) == (tau-1)*diff
    errors = jnp.maximum(jnp.float32(tau) * diff, jnp.float32(tau - 1.0) * diff)

    # Un-normalised recency weight: h^((n-1)-idx) = exp(pat[p] + log(h)*((n-1)-g)).
    # 1/sum(w) and the final 1/n are folded into one wrapper-side scalar scale.
    # NOTE: int32 index math -> wrapper asserts n < 2**31 - 2**23.
    base_expo = ((n - 1) - b * (tile_r * lane)).astype(jnp.float32)
    arg = pat_ref[...] + jnp.float32(log_h) * base_expo
    if log_h < 0.0:
        # Keep the weight finite on zero-padded tail positions (idx > n-1); those
        # positions have errors == 0, so any finite weight contributes nothing.
        arg = jnp.minimum(arg, jnp.float32(0.0))
    contrib = errors * jnp.exp(arg)       # exp issues on the EUP (own VLIW slot)

    def _accumulate(x):
        # Pure-VPU fold of the (tile_r, lane) tile into the resident (8, lane)
        # accumulator: no per-step cross-sublane (XLU) reduce in the hot loop.
        o_ref[...] += x.reshape(tile_r // 8, 8, lane).sum(axis=0)[None]

    if needs_mask:
        is_full = (b + 1) * tile_r <= rows_valid

        @pl.when(is_full)
        def _clean():
            _accumulate(contrib)

        @pl.when(jnp.logical_not(is_full))
        def _masked():
            # Partial last block (rows past rows_valid are undefined) or an
            # overhang block from the parallel split (fully masked to zero).
            row = jax.lax.broadcasted_iota(jnp.int32, (tile_r, lane), 0)
            valid = (b * tile_r + row) < rows_valid
            _accumulate(jnp.where(valid, contrib, jnp.float32(0.0)))
    else:
        _accumulate(contrib)


def quantile_loss(y_true, y_pred, *, tau, weighting_factor,
                  max_tile_rows=4096, num_cores=2):
    """Pallas TPU implementation of QuantileLoss.forward (returns an f32 scalar)."""
    assert y_true.shape == y_pred.shape and y_true.ndim == 1
    n = int(y_true.shape[0])
    assert 0 < n < 2 ** 31 - 2 ** 23, "in-kernel index math is int32"
    tau = float(tau)
    assert 0.0 <= tau <= 1.0, "branch-free pinball form requires tau in [0, 1]"
    h = float(weighting_factor)
    assert h > 0.0

    # Sub-32-bit dtypes pack along sublanes -> use a larger row granule.
    itemsize = jnp.dtype(y_true.dtype).itemsize
    grain = max(8, 32 // itemsize)
    assert max_tile_rows % grain == 0 and max_tile_rows >= grain

    rows_full = pl.cdiv(n, _LANE)
    if n % _LANE == 0 and rows_full >= grain:
        # Zero-copy path: the (rows, 128) reshape is a free bitcast; skipping
        # jnp.pad avoids re-reading + re-writing both arrays in HBM pre-kernel.
        rows = rows_full
        yt2 = y_true.reshape(rows, _LANE)
        yp2 = y_pred.reshape(rows, _LANE)
        tile_r = min(max_tile_rows, (rows // grain) * grain)
    else:
        # Ragged tail (or tiny input): a pad copy is unavoidable to fill the
        # last row, so round the row count up to the granule while copying.
        rows = _round_up(rows_full, grain)
        pad = rows * _LANE - n
        yt2 = jnp.pad(y_true, (0, pad)).reshape(rows, _LANE)
        yp2 = jnp.pad(y_pred, (0, pad)).reshape(rows, _LANE)
        tile_r = min(max_tile_rows, rows)

    nblocks = pl.cdiv(rows, tile_r)
    ncores = max(1, min(int(num_cores), nblocks))
    steps_per_core = pl.cdiv(nblocks, ncores)
    needs_mask = (rows % tile_r != 0) or (ncores * steps_per_core > nblocks)

    # Normalisation: exact geometric series.  (For h > 1 with huge n the f32
    # torch reference already overflows to inf/NaN; we do not chase that regime.)
    log_h = math.log(h)
    if abs(h - 1.0) < 1e-12:
        s = float(n)
    else:
        s = (1.0 - h ** n) / (1.0 - h)
    scale = 1.0 / (s * n)           # folds 1/sum(weights) and the final mean

    kernel = functools.partial(
        _quantile_loss_kernel,
        tau=tau, log_h=log_h, n=n, rows_valid=rows, tile_r=tile_r, lane=_LANE,
        steps_per_core=steps_per_core, nblocks=nblocks, needs_mask=needs_mask)

    def in_map(c, j):
        # Clamp overhang steps of the parallel split onto the last real block;
        # their contribution is masked to zero in-kernel.
        return (jnp.minimum(c * steps_per_core + j, nblocks - 1), 0)

    out = pl.pallas_call(
        kernel,
        out_shape=jax.ShapeDtypeStruct((ncores, 8, _LANE), jnp.float32),
        grid_spec=pltpu.PrefetchScalarGridSpec(
            num_scalar_prefetch=0,
            grid=(ncores, steps_per_core),
            in_specs=[
                pl.BlockSpec((tile_r, _LANE), in_map),
                pl.BlockSpec((tile_r, _LANE), in_map),
            ],
            out_specs=pl.BlockSpec((1, 8, _LANE), lambda c, j: (c, 0, 0)),
            scratch_shapes=[pltpu.VMEM((tile_r, _LANE), jnp.float32)],
        ),
        compiler_params=pltpu.CompilerParams(
            dimension_semantics=("parallel", "arbitrary"),
            vmem_limit_bytes=48 * 1024 * 1024,
        ),
    )(yt2, yp2)
    # Tiny cross-lane / cross-core reduce of the (ncores, 8, 128) partials plus
    # the folded 1/(sum(w)*n) scale happen outside the hot loop.
    return jnp.sum(out) * jnp.float32(scale)


def _reference(y_true, y_pred, tau, weighting_factor):
    """Direct JAX port of the PyTorch QuantileLoss.forward."""
    yt = y_true.astype(jnp.float32)
    yp = y_pred.astype(jnp.float32)
    diff = yt - yp
    errors = jnp.where(diff > 0, tau * diff, (1.0 - tau) * (-diff))
    w = jnp.power(jnp.float32(weighting_factor),
                  jnp.arange(yt.shape[0] - 1, -1, -1, dtype=jnp.float32))
    w = w / jnp.sum(w)
    return jnp.mean(errors * w)


if __name__ == "__main__":
    key = jax.random.PRNGKey(0)
    ks = jax.random.split(key, 8)

    def check(name, got, ref, rtol=2e-4, atol=1e-8):
        got = jax.block_until_ready(got)
        assert jnp.allclose(got, ref, rtol=rtol, atol=atol), (name, got, ref)

    # 1) Lane/row-aligned series (zero-copy reshape), multi-block, 2-way split.
    n1 = 4096
    a1 = jax.random.normal(ks[0], (n1,), jnp.float32)
    b1 = jax.random.normal(ks[1], (n1,), jnp.float32)
    check("aligned",
          quantile_loss(a1, b1, tau=0.7, weighting_factor=0.9, max_tile_rows=8),
          _reference(a1, b1, 0.7, 0.9))

    # 2) Ragged length: padded tail, partial last block + masked overhang block.
    n2 = 10000
    a2 = jax.random.normal(ks[2], (n2,), jnp.float32)
    b2 = jax.random.normal(ks[3], (n2,), jnp.float32)
    check("ragged",
          quantile_loss(a2, b2, tau=0.7, weighting_factor=0.9, max_tile_rows=32),
          _reference(a2, b2, 0.7, 0.9))

    # 3) bf16 inputs streamed as-is (in-kernel upcast, f32 accumulation).
    n3 = 1000
    a3 = jax.random.normal(ks[4], (n3,), jnp.float32).astype(jnp.bfloat16)
    b3 = jax.random.normal(ks[5], (n3,), jnp.float32).astype(jnp.bfloat16)
    check("bf16",
          quantile_loss(a3, b3, tau=0.7, weighting_factor=0.9),
          _reference(a3, b3, 0.7, 0.9))

    # 4) Growing weights (h > 1), small aligned series (single padded block).
    n4 = 512
    a4 = jax.random.normal(ks[6], (n4,), jnp.float32)
    b4 = jax.random.normal(ks[7], (n4,), jnp.float32)
    check("h_gt_1",
          quantile_loss(a4, b4, tau=0.3, weighting_factor=1.03),
          _reference(a4, b4, 0.3, 1.03))

    print("KERNEL_OK")
</pallas_src>

<mosaic_0001>
module attributes {stable_mosaic.version = 11 : i64} {
  func.func @_quantile_loss_kernel(%arg0: i32, %arg1: i32, %arg2: memref<8x128xf32, #tpu.memory_space<vmem>>, %arg3: memref<8x128xf32, #tpu.memory_space<vmem>>, %arg4: memref<1x8x128xf32, #tpu.memory_space<vmem>>, %arg5: memref<8x128xf32, #tpu.memory_space<vmem>>) attributes {dimension_semantics = [#tpu.dimension_semantics<parallel>, #tpu.dimension_semantics<arbitrary>], iteration_bounds = array<i64: 2, 2>, scalar_prefetch = 0 : i64, scratch_operands = 1 : i64, tpu.core_type = #tpu.core_type<tc>, window_params = [{transform_indices = @transform_0, window_bounds = array<i64: 8, 128>}, {transform_indices = @transform_1, window_bounds = array<i64: 8, 128>}, {transform_indices = @transform_2, window_bounds = array<i64: 1, 8, 128>}]} {
    %c0_i32 = arith.constant 0 : i32
    %0 = arith.cmpi eq, %arg1, %c0_i32 : i32
    %1 = arith.extui %0 : i1 to i32
    %c0_i32_0 = arith.constant 0 : i32
    %2 = arith.cmpi ne, %1, %c0_i32_0 : i32
    scf.if %2 {
      %cst_16 = arith.constant 0.000000e+00 : f32
      %30 = vector.broadcast %cst_16 : f32 to vector<1x8x128xf32>
      %c0_17 = arith.constant 0 : index
      %c0_18 = arith.constant 0 : index
      %c0_19 = arith.constant 0 : index
      %31 = vector.load %arg4[%c0_17, %c0_18, %c0_19] : memref<1x8x128xf32, #tpu.memory_space<vmem>>, vector<1x8x128xf32>
      tpu.vector_store %arg4[%c0_17, %c0_18, %c0_19], %30 {strides = array<i32>} : memref<1x8x128xf32, #tpu.memory_space<vmem>>, vector<1x8x128xf32>,
      %32 = tpu.iota {dimensions = array<i32: 0>} : vector<8x128xi32>
      %33 = tpu.iota {dimensions = array<i32: 1>} : vector<8x128xi32>
      %c128_i32 = arith.constant 128 : i32
      %34 = vector.broadcast %c128_i32 : i32 to vector<8x128xi32>
      %35 = arith.muli %32, %34 : vector<8x128xi32>
      %36 = arith.addi %35, %33 : vector<8x128xi32>
      %37 = arith.sitofp %36 : vector<8x128xi32> to vector<8x128xf32>
      %cst_20 = arith.constant 0.105360515 : f32
      %38 = vector.broadcast %cst_20 : f32 to vector<8x128xf32>
      %39 = arith.mulf %38, %37 : vector<8x128xf32>
      %c0_21 = arith.constant 0 : index
      %c0_22 = arith.constant 0 : index
      %40 = vector.load %arg5[%c0_21, %c0_22] : memref<8x128xf32, #tpu.memory_space<vmem>>, vector<8x128xf32>
      tpu.vector_store %arg5[%c0_21, %c0_22], %39 {strides = array<i32>} : memref<8x128xf32, #tpu.memory_space<vmem>>, vector<8x128xf32>,
    } else {
    }
    %c2_i32 = arith.constant 2 : i32
    %3 = arith.muli %arg0, %c2_i32 : i32
    %4 = arith.addi %3, %arg1 : i32
    %c0 = arith.constant 0 : index
    %c0_1 = arith.constant 0 : index
    %5 = vector.load %arg2[%c0, %c0_1] : memref<8x128xf32, #tpu.memory_space<vmem>>, vector<8x128xf32>
    %c0_2 = arith.constant 0 : index
    %c0_3 = arith.constant 0 : index
    %6 = vector.load %arg3[%c0_2, %c0_3] : memref<8x128xf32, #tpu.memory_space<vmem>>, vector<8x128xf32>
    %7 = arith.subf %5, %6 : vector<8x128xf32>
    %cst = arith.constant 0.699999988 : f32
    %8 = vector.broadcast %cst : f32 to vector<8x128xf32>
    %9 = arith.mulf %8, %7 : vector<8x128xf32>
    %cst_4 = arith.constant -3.000000e-01 : f32
    %10 = vector.broadcast %cst_4 : f32 to vector<8x128xf32>
    %11 = arith.mulf %10, %7 : vector<8x128xf32>
    %12 = arith.maximumf %9, %11 : vector<8x128xf32>
    %c1024_i32 = arith.constant 1024 : i32
    %13 = arith.muli %4, %c1024_i32 : i32
    %c4095_i32 = arith.constant 4095 : i32
    %14 = arith.subi %c4095_i32, %13 : i32
    %15 = arith.sitofp %14 : i32 to f32
    %c0_5 = arith.constant 0 : index
    %c0_6 = arith.constant 0 : index
    %16 = vector.load %arg5[%c0_5, %c0_6] : memref<8x128xf32, #tpu.memory_space<vmem>>, vector<8x128xf32>
    %cst_7 = arith.constant -0.105360515 : f32
    %17 = arith.mulf %cst_7, %15 : f32
    %18 = vector.broadcast %17 : f32 to vector<8x128xf32>
    %19 = arith.addf %16, %18 : vector<8x128xf32>
    %cst_8 = arith.constant 0.000000e+00 : f32
    %20 = vector.broadcast %cst_8 : f32 to vector<8x128xf32>
    %21 = arith.minimumf %19, %20 : vector<8x128xf32>
    %22 = math.exp %21 : vector<8x128xf32>
    %23 = arith.mulf %12, %22 : vector<8x128xf32>
    %c0_9 = arith.constant 0 : index
    %c0_10 = arith.constant 0 : index
    %c0_11 = arith.constant 0 : index
    %24 = vector.load %arg4[%c0_9, %c0_10, %c0_11] : memref<1x8x128xf32, #tpu.memory_space<vmem>>, vector<1x8x128xf32>
    %25 = vector.shape_cast %23 : vector<8x128xf32> to vector<1x8x128xf32>
    %cst_12 = arith.constant dense<0.000000e+00> : vector<8x128xf32>
    %26 = vector.multi_reduction <add>, %25, %cst_12 [0] : vector<1x8x128xf32> to vector<8x128xf32>
    %27 = vector.shape_cast %26 : vector<8x128xf32> to vector<1x8x128xf32>
    %28 = arith.addf %24, %27 : vector<1x8x128xf32>
    %c0_13 = arith.constant 0 : index
    %c0_14 = arith.constant 0 : index
    %c0_15 = arith.constant 0 : index
    %29 = vector.load %arg4[%c0_13, %c0_14, %c0_15] : memref<1x8x128xf32, #tpu.memory_space<vmem>>, vector<1x8x128xf32>
    tpu.vector_store %arg4[%c0_13, %c0_14, %c0_15], %28 {strides = array<i32>} : memref<1x8x128xf32, #tpu.memory_space<vmem>>, vector<1x8x128xf32>,
    return
  }
  func.func @transform_0(%arg0: i32, %arg1: i32) -> (i32, i32) {
    %c2_i32 = arith.constant 2 : i32
    %0 = arith.muli %arg0, %c2_i32 : i32
    %1 = arith.addi %0, %arg1 : i32
    %c3_i32 = arith.constant 3 : i32
    %2 = arith.minsi %1, %c3_i32 : i32
    %c0_i32 = arith.constant 0 : i32
    %c0_i32_0 = arith.constant 0 : i32
    return %2, %c0_i32 : i32, i32
  }
  func.func @transform_1(%arg0: i32, %arg1: i32) -> (i32, i32) {
    %c2_i32 = arith.constant 2 : i32
    %0 = arith.muli %arg0, %c2_i32 : i32
    %1 = arith.addi %0, %arg1 : i32
    %c3_i32 = arith.constant 3 : i32
    %2 = arith.minsi %1, %c3_i32 : i32
    %c0_i32 = arith.constant 0 : i32
    %c0_i32_0 = arith.constant 0 : i32
    return %2, %c0_i32 : i32, i32
  }
  func.func @transform_2(%arg0: i32, %arg1: i32) -> (i32, i32, i32) {
    %c0_i32 = arith.constant 0 : i32
    %c0_i32_0 = arith.constant 0 : i32
    %c0_i32_1 = arith.constant 0 : i32
    return %arg0, %c0_i32, %c0_i32_0 : i32, i32, i32
  }
}

</mosaic_0001>

<bundles_post_ra>
// kernel: tpu_custom_call.1
= control target key start
LH: loop header
LB: loop body
LE: loop exit
PB: predicated region body
PF: predicated region fallthrough
CT: control target
= control target key end

     0   :  { %s1031_s0 = inlined_call_operand.hbm [shape: f32[32,128], index: 0, kind: input, shape index: {}]   ;;  %s1032_s1 = inlined_call_operand.hbm [shape: f32[32,128], index: 1, kind: input, shape index: {}]   ;;  %s1033_s2 = inlined_call_operand.hbm [shape: f32[2,8,128], index: 2, kind: output, shape index: {}]  }
   0x1   :  { %1040 = sst [smem:[#allocation14_spill]] %s1031_s0 }
   0x2   :  { %7 = vsyncpa [#allocation4], 0 }
   0x3   :  { %9 = vsyncpa [#allocation4 + $0x1], 0 }
   0x4   :  { %10 = vsyncpa [#allocation7], 0 }
   0x5   :  { %12 = vsyncpa [#allocation7 + $0x1], 0 }
   0x6   :  { %13 = vsyncpa [#allocation5], 0 }
   0x7   :  { %15 = vsyncpa [#allocation5 + $0x1], 0  ;;  %s737_s9 = smov 0   ;;  %s739_s10 = smov 0  }
   0x8   :  { %s741_s11 = smov 0   ;;  %s743_s12 = smov 0  }
   0x9   :  { %s745_s13 = smov 0   ;;  %s747_s14 = smov 0  }
   0xa   :  { %s749_s15 = smov 0   ;;  %s751_s16 = smov 0  }
   0xb   :  { %s753_s17 = smov 0   ;;  %s755_s18 = smov 0  }
   0xc   :  { %s757_s19 = smov 0  }
   0xd LB: > { %s395_s20 = sadd.s32 4294967295, %s716_s19   ;;  %s396_s21 = sadd.s32 4294967294, %s716_s19   ;;  %s716_s19 = sphi %s757_s19, %s21_s19   ;;  %s712_s18 = sphi %s755_s18, %s1069_s18   ;;  %s708_s17 = sphi %s753_s17, %s1068_s17   ;;  %s704_s16 = sphi %s751_s16, %s1067_s16   ;;  %s700_s15 = sphi %s749_s15, %s1066_s15   ;;  %s696_s14 = sphi %s747_s14, %s1065_s14   ;;  %s692_s13 = sphi %s745_s13, %s1064_s13   ;;  %s688_s12 = sphi %s743_s12, %s1063_s12   ;;  %s684_s11 = sphi %s741_s11, %s1062_s11   ;;  %s680_s10 = sphi %s739_s10, %s1061_s10   ;;  %s676_s9 = sphi %s737_s9, %s1060_s9  }
   0xe   : > { %s30_s22 = sadd.s32 1, %s708_s17  ;;  %s33_s23 = sadd.s32 1, %s712_s18 }
   0xf   : > { %p31_p0 = scmp.ge.s32.totalorder %s30_s22, 2  ;;  %s397_s24 = sshll.u32 %s712_s18, 1 }
  0x10   : > { %s38_s25 = sadd.s32 %s708_s17, %s397_s24  ;;  %s48_s26 = sadd.s32 1, %s696_s14 }
  0x11   : > { %s1071_s22 = smov (%p31_p0, %s30_s22), 0  ;;  %s1073_s23 = smov (!%p31_p0, %s33_s23), %s712_s18 }
  0x12   : > { %1041 = sst [smem:[#allocation12_spill]] %s1071_s22  ;;  %p39_p1 = scmp.lt.s32.totalorder %s38_s25, 3 }
  0x13   : > { %p55_p2 = scmp.ne.s32.totalorder %s696_s14, %s692_s13  ;;  %p35_p3 = scmp.ge.s32.totalorder %s1073_s23, 2 }
  0x14   : > { %p56_p4 = scmp.eq.s32.totalorder %s716_s19, 0  ;;  %s1075_s25 = smov (!%p39_p1, %s38_s25), 3 }
  0x15   : > { %s1077_s23 = smov (%p35_p3, %s1073_s23), 0  ;;  %p61_p6 = scmp.ne.s32.totalorder %s692_s13, %s688_s12 }
  0x16   : > { %1042 = sst [smem:[#allocation13_spill]] %s1077_s23  ;;  %p809_p5 = por %p56_p4, %p55_p2 }
  0x17   : > { %s398_s28 = sshll.u32 %s1077_s23, 1  ;;  %p62_p7 = scmp.eq.s32.totalorder %s395_s20, 0 }
  0x18   : > { %s42_s29 = sadd.s32 %s398_s28, %s1071_s22  ;;  %s105_s30 = ssub.s32 %s712_s18, %s1077_s23 }
  0x19   : > { %p43_p8 = scmp.lt.s32.totalorder %s42_s29, 3  ;;  %p821_p9 = por %p62_p7, %p61_p6 }
  0x1a   : > { %p106_p10 = scmp.eq.s32.totalorder %s105_s30, 0  ;;  %s108_s4 = sadd.s32 1, %s684_s11 }
  0x1b   : > { %s1044_s3 = scalar_select %p821_p9, 1, 0 }
  0x1c   : > { %s1079_s29 = smov (!%p43_p8, %s42_s29), 3  ;;  %p118_p11 = scmp.ne.s32.totalorder %s684_s11, %s680_s10 }
  0x1d   : > { %s827_s5 = scalar_select %p106_p10, %s684_s11, %s108_s4  }
  0x1e   : > { %s45_s6 = ssub.s32 %s1075_s25, %s1079_s29  ;;  %p119_p13 = scmp.eq.s32.totalorder %s395_s20, 3 }
  0x1f   : > { %p46_p12 = scmp.eq.s32.totalorder %s45_s6, 0  ;;  %p124_p0 = scmp.ne.s32.totalorder %s680_s10, %s676_s9 }
  0x20   : > { %p125_p1 = scmp.eq.s32.totalorder %s396_s21, 3  ;;  %p841_p2 = por %p119_p13, %p118_p11 }
  0x21   : > { %s839_s7 = scalar_select %p46_p12, %s696_s14, %s48_s26  }
  0x22   : > { %s1045_s8 = scalar_select %p841_p2, 1, 0 }
  0x23   : > { %p845_p3 = por %p125_p1, %p124_p0  ;;  %p437_p4 = scmp.lt.s32.totalorder %s716_s19, 4 }
  0x24   : > { %s851_s24 = sand.u32 1, %s696_s14   ;;  %s1035_s20 = sshll.u32 %s1075_s25, 7 }
  0x25   : > { %s1046_s12 = scalar_select %p845_p3, 1, 0 }
  0x26   : > { %s1034_s28 = sshll.u32 %s851_s24, 3  ;;  %s1047_s0 = sld [smem:[#allocation14_spill]] }
  0x27   : > { %s149_s30 = scalar_lea.vmem [#allocation3], %s1034_s28  ;;  %p866_p6 = pnand %p437_p4, %p809_p5 }
  0x28   : > { %s160_s4 = sshll.u32 %s149_s30, 4  ;;  %s146_s21 = scalar_lea.sflag [#allocation4], %s851_s24  ;;  %s870_s4 = int_to_ptr.vmem [resolvable:$true] %s160_s4 }
  0x29   : > { %p532_p11 = pneg %p866_p6 }
  0x2c   : > { %s860_s29 = scalar_lea.hbm %s1047_s0, %s1035_s20  ;;  %s535_s28 = scalar_lea.hbm %s1047_s0, 512 }
  0x2d   : > { %s530_s26 = scalar_lea.hbm %s860_s29, 128  ;;  %p536_p5 = scmp.lt.u32.totalorder %s860_s29, %s1047_s0 }
  0x2e   : > { %p531_p10 = scmp.ne.s32.totalorder %s860_s29, %s530_s26  ;;  %p537_p0 = scmp.lt.u32.totalorder %s535_s28, %s530_s26 }
  0x2f   : > { %p539_p4 = scmp.lt.u32.totalorder %s530_s26, %s860_s29 }
  0x30   : > { %p533_p12 = pnand %p532_p11, %p531_p10  ;;  %p538_p1 = por %p537_p0, %p536_p5 }
  0x32   : > { %p534_p13 = pneg %p533_p12  ;;  %p540_p7 = por %p539_p4, %p538_p1 }
  0x34   : > { %p541_p8 = pnand %p540_p7, %p534_p13 }
  0x36   : > { %544 = shalt.err (!%p541_p8)
}
  0x37   : > { %s545_s22 = scalar_lea.vmem %s870_s4, 128  ;;  %s718_s27 = smov [#allocation3]  }
  0x38   : > { %p546_p10 = scmp.ne.s32.totalorder %s870_s4, %s545_s22  ;;  %s550_s30 = sshll.u32 %s718_s27, 4  ;;  %s551_s30 = int_to_ptr.vmem [resolvable:$false] %s550_s30 }
  0x39   : > { %s552_s23 = scalar_lea.vmem %s551_s30, 256  ;;  %p553_p2 = scmp.lt.s32.totalorder %s870_s4, %s551_s30 }
  0x3a   : > { %p548_p12 = pnand %p546_p10, %p532_p11  ;;  %p554_p5 = scmp.lt.s32.totalorder %s552_s23, %s545_s22 }
  0x3c   : > { %p549_p3 = pneg %p548_p12  ;;  %p555_p0 = por %p554_p5, %p553_p2 }
  0x3e   : > { %p556_p1 = pnand %p555_p0, %p549_p3 }
  0x40   : > { %559 = shalt.err (!%p556_p1)
}
  0x41   : > { %429 = dma.hbm_to_vmem [thread:$0]  (!%p866_p6), %s860_s29, 128, %s870_s4, %s146_s21  }
  0x42   : > { %p1049_p7 = scmp.lt.s32.totalorder %s716_s19, 5  ;;  %p1050_p8 = scmp.ge.s32.totalorder %s716_s19, 1 }
  0x43   : > { %s1052_s22 = sshll.u32 %s1075_s25, 7  ;;  %s1053_s30 = sshll.u32 %s851_s24, 3 }
  0x44   : > { %p904_p13 = pnand %p1050_p8, %p1049_p7  ;;  %s913_s27 = scalar_lea.hbm %s1032_s1, %s1052_s22 }
  0x45   : > { %s171_s23 = scalar_lea.vmem [#allocation6], %s1053_s30  ;;  %s168_s29 = scalar_lea.sflag [#allocation7], %s851_s24 }
  0x46   : > { %s1051_s20 = scalar_select %p904_p13, 1, 0 }
  0x47   : > { %s182_s0 = sshll.u32 %s171_s23, 4  ;;  %s560_s4 = scalar_lea.hbm %s913_s27, 128  ;;  %s183_s0 = int_to_ptr.vmem [resolvable:$true] %s182_s0 }
  0x48   : > { %p561_p2 = scmp.ne.s32.totalorder %s913_s27, %s560_s4  ;;  %s565_s22 = scalar_lea.hbm %s1032_s1, 512 }
  0x49   : > { %p566_p10 = scmp.lt.u32.totalorder %s913_s27, %s1032_s1  ;;  %p567_p12 = scmp.lt.u32.totalorder %s565_s22, %s560_s4 }
  0x4a   : > { %p563_p3 = pnand %p561_p2, %p532_p11  ;;  %p569_p0 = scmp.lt.u32.totalorder %s560_s4, %s913_s27 }
  0x4b   : > { %p568_p5 = por %p567_p12, %p566_p10 }
  0x4c   : > { %p564_p4 = pneg %p563_p3 }
  0x4d   : > { %p570_p1 = por %p569_p0, %p568_p5 }
  0x4f   : > { %p571_p7 = pnand %p570_p1, %p564_p4 }
  0x51   : > { %574 = shalt.err (!%p571_p7)
}
  0x52   : > { %s575_s24 = scalar_lea.vmem %s183_s0, 128  ;;  %s719_s30 = smov [#allocation6]  }
  0x53   : > { %p576_p8 = scmp.ne.s32.totalorder %s183_s0, %s575_s24  ;;  %s580_s23 = sshll.u32 %s719_s30, 4  ;;  %s581_s23 = int_to_ptr.vmem [resolvable:$false] %s580_s23 }
  0x54   : > { %s582_s25 = scalar_lea.vmem %s581_s23, 256  ;;  %p583_p9 = scmp.lt.s32.totalorder %s183_s0, %s581_s23 }
  0x55   : > { %p578_p2 = pnand %p576_p8, %p532_p11  ;;  %p584_p13 = scmp.lt.s32.totalorder %s582_s25, %s575_s24 }
  0x57   : > { %p579_p3 = pneg %p578_p2  ;;  %p585_p10 = por %p584_p13, %p583_p9 }
  0x59   : > { %p586_p12 = pnand %p585_p10, %p579_p3 }
  0x5b   : > { %589 = shalt.err (!%p586_p12)
}
  0x5c   : > { %432 = dma.hbm_to_vmem [thread:$0]  (!%p866_p6), %s913_s27, 128, %s183_s0, %s168_s29  }
  0x5d   : > { %p1054_p4 = scmp.ne.s32.totalorder %s1051_s20, 0 }
  0x5e   : > { %s193_s4 = sand.u32 (!%p1054_p4), 1, %s692_s13   ;;  %p1055_p11 = scmp.ne.s32.totalorder (!%p1054_p4), %s1044_s3, 0 }
  0x5f   : > { %191 = sbr.rel (%p1054_p4) target bundleno = 163 (0xa3), region = 28  ;;  %s410_s21 = sshll.u32 (!%p1054_p4), %s193_s4, 3 }
  0x60   : > { %s194_s22 = scalar_lea.sflag (!%p1054_p4), [#allocation4], %s193_s4  ;;  %s940_s28 = scalar_lea.vmem (!%p1054_p4), [#allocation3], %s410_s21 }
  0x66   : > { %663 = dma.done.wait (%p1055_p11), %s194_s22, 128  }
  0x67   : > { %665 = vsyncadd (%p1055_p11), %s194_s22, 4294967168  ;;  %s203_s26 = scalar_lea.sflag [#allocation7], %s193_s4  ;;  %s206_s6 = scalar_lea.vmem [#allocation6], %s410_s21 }
  0x68   : > { %667 = dma.done.wait (%p1055_p11), %s203_s26, 128  }
  0x69   : > { %669 = vsyncadd (%p1055_p11), %s203_s26, 4294967168  ;;  %s229_s0 = sand.u32 1, %s680_s10   ;;  %p413_p9 = scmp.ne.s32.totalorder %s700_s15, 0 }
  0x6a   : > { %s412_s20 = sshll.u32 %s229_s0, 3  ;;  %v245_v0 = vlaneseq (!%p413_p9)  ;;  %v720_v1 = vmov (!%p413_p9), 0.0  }
  0x6b   : > { %s953_s27 = scalar_lea.vmem [#allocation8], %s412_s20  ;;  %243 = sbr.rel (%p413_p9) target bundleno = 119 (0x77), region = 40 }
  0x6c   : > { %244 = vst [vmem:[%s953_s27] sm:$0xff] (!%p413_p9), %v720_v1  ;;  %v246_v2 = vshrl.u32 (!%p413_p9), %v245_v0, 7  ;;  %v248_v3 = vand.u32 (!%p413_p9), 127, %v245_v0 }
  0x6e   : > { %v249_v4 = vmul.u32 (!%p413_p9), 128, %v246_v2 }
  0x70   : > { %v250_v5 = vadd.s32 (!%p413_p9), %v249_v4, %v248_v3 }
  0x72   : > { %v251_v6 = vcvt.s32.f32 %v250_v5 }
  0x74   : > { %v252_v7 = vmul.f32 0.105360515, %v251_v6 }
  0x76   : > { %253 = vst [vmem:[#allocation2] sm:$0xff] %v252_v7 }
  0x77 PF: > { %s414_s3 = sshll.u32 %s704_s16, 1  ;;  %v256_v11 = vld [vmem:[%s940_s28] sm:$0xff]  ;;  %v257_v12 = vld [vmem:[%s206_s6] sm:$0xff]  ;;  %s291_s4 = sshll.u32 %s953_s27, 4  ;;  %s968_s4 = int_to_ptr.vmem [resolvable:$true] %s291_s4 }
  0x78   : > { %s255_s29 = sadd.s32 %s700_s15, %s414_s3  ;;  %v258_v15 = vsub.f32 %v256_v11, %v257_v12  ;;  %v273_v20 = vld [vmem:[%s953_s27] sm:$0xff]  ;;  %s417_s15 = sshll.u32 %s704_s16, 7 }
  0x79   : > { %s415_s24 = sshll.u32 %s255_s29, 10  ;;  %s966_s28 = scalar_lea.hbm %s1033_s2, %s417_s15 }
  0x7a   : > { %s263_s30 = ssub.s32 4095, %s415_s24  ;;  %v259_v16 = vmul.f32 0.7, %v258_v15  ;;  %v260_v17 = vmul.f32 -0.3, %v258_v15  ;;  %s278_s26 = scalar_lea.sflag [#allocation5], %s229_s0 }
  0x7b   : > { %s264_s23 = scvt.s32.f32 %s263_s30  ;;  %s590_s6 = scalar_lea.vmem %s968_s4, 128 }
  0x7c   : > { %v261_v18 = vmax.f32 %v259_v16, %v260_v17  ;;  %p591_p6 = scmp.ne.s32.totalorder %s968_s4, %s590_s6  ;;  %p1056_p13 = scmp.ne.s32.totalorder %s1045_s8, 0 }
  0x7d   : > { %v265_v8 = vld [vmem:[#allocation2] sm:$0xff]  ;;  %s266_s25 = smul.f32 -0.105360515, %s264_s23  ;;  %s721_s16 = smov [#allocation8]  }
  0x7e   : > { %p592_p5 = pnand %p591_p6, %p1056_p13  ;;  %s594_s20 = sshll.u32 %s721_s16, 4  ;;  %s595_s20 = int_to_ptr.vmem [resolvable:$false] %s594_s20 }
  0x7f   : > { %v267_v9 = vstv %s266_s25  ;;  %s596_s3 = scalar_lea.vmem %s595_s20, 256  ;;  %p597_p1 = scmp.lt.s32.totalorder %s968_s4, %s595_s20 }
  0x80   : > { %v268_v10 = vadd.f32 %v267_v9, %v265_v8  ;;  %p593_p0 = pneg %p592_p5  ;;  %p598_p7 = scmp.lt.s32.totalorder %s596_s3, %s590_s6 }
  0x82   : > { %v269_v13 = vmin.f32 %v268_v10, 0.0  ;;  %p599_p8 = por %p598_p7, %p597_p1 }
  0x84   : > { %v270_v14 = vmul.f32 1.442695, %v269_v13  ;;  %p600_p2 = pnand %p599_p8, %p593_p0 }
  0x86   : > { %528 = vpow2.f32 %v270_v14 }
  0x90   : > { %v529_v19 = vpop.eup %528 }
  0x91   : > { %v272_v21 = vmul.f32 %v529_v19, %v261_v18 }
  0x93   : > { %v275_v22 = vadd.f32 %v273_v20, %v272_v21 }
  0x95   : > { %276 = vst [vmem:[%s953_s27] sm:$0xff] %v275_v22 }
  0x96   : > { %603 = shalt.err (!%p600_p2)
}
  0x97   : > { %s604_s0 = scalar_lea.hbm %s966_s28, 128  ;;  %s608_s24 = scalar_lea.hbm %s1033_s2, 256 }
  0x98   : > { %p605_p3 = scmp.ne.s32.totalorder %s966_s28, %s604_s0  ;;  %p609_p4 = scmp.lt.u32.totalorder %s966_s28, %s1033_s2 }
  0x99   : > { %p610_p11 = scmp.lt.u32.totalorder %s608_s24, %s604_s0  ;;  %p612_p6 = scmp.lt.u32.totalorder %s604_s0, %s966_s28 }
  0x9a   : > { %p606_p10 = pnand %p605_p3, %p1056_p13 }
  0x9b   : > { %p611_p9 = por %p610_p11, %p609_p4 }
  0x9c   : > { %p607_p12 = pneg %p606_p10 }
  0x9d   : > { %p613_p5 = por %p612_p6, %p611_p9 }
  0x9f   : > { %p614_p0 = pnand %p613_p5, %p607_p12 }
  0xa1   : > { %617 = shalt.err (!%p614_p0)
}
  0xa2   : > { %424 = dma.vmem_to_hbm [thread:$0]  (%p1056_p13), %s968_s4, 128, %s966_s28, %s278_s26  }
  0xa3 PF: > { %p438_p1 = scmp.ge.s32.totalorder %s716_s19, 2  ;;  %s303_s25 = sand.u32 1, %s676_s9  }
  0xa4   : > { %p1057_p7 = scmp.ne.s32.totalorder %s1046_s12, 0  ;;  %s304_s15 = scalar_lea.sflag [#allocation5], %s303_s25 }
  0xa6   : > { %p434_p8 = pnand %p438_p1, %p1057_p7 }
  0xa8   : > { %671 = dma.done.wait (!%p434_p8), %s304_s15, 128  }
  0xa9   : > { %673 = vsyncadd (!%p434_p8), %s304_s15, 4294967168  ;;  %s21_s19 = sadd.s32 1, %s716_s19   ;;  %s1058_s8 = sld [smem:[#allocation12_spill]] }
  0xaa   : > { %p18_p2 = scmp.ge.s32.totalorder %s21_s19, 6   ;;  %s1059_s4 = sld [smem:[#allocation13_spill]] }
  0xab   : > { %s1060_s9 = smov %s680_s10  ;;  %s1061_s10 = smov %s684_s11 }
  0xac   : > { %s1062_s11 = smov %s827_s5  ;;  %s1063_s12 = smov %s692_s13 }
  0xad   : > { %s1064_s13 = smov %s696_s14  ;;  %s1065_s14 = smov %s839_s7 }
  0xae   : > { %s1066_s15 = smov %s708_s17  ;;  %s1067_s16 = smov %s712_s18 }
  0xaf   : > { %s1068_s17 = smov %s1058_s8  ;;  %20 = sbr.rel (!%p18_p2) target bundleno = 13 (0xd), region = 90 }
  0xb0   : > { %s1069_s18 = smov %s1059_s4 }
  0xb6   :  { %309 = vsyncpa [#allocation4], 1 }
  0xb7   :  { %311 = vsyncpa [#allocation4 + $0x1], 1 }
  0xb8   :  { %312 = vsyncpa [#allocation7], 1 }
  0xb9   :  { %314 = vsyncpa [#allocation7 + $0x1], 1 }
  0xba   :  { %315 = vsyncpa [#allocation5], 1 }
  0xbb   :  { %317 = vsyncpa [#allocation5 + $0x1], 1 }

</bundles_post_ra>
